<compile_context>
chip_gen: v7x
topology: tpu7x:2x2x1
jax: 0.10.0
libtpu: 0.0.40
codegen_flags: <defaults>
</compile_context>

<pallas_src>
import math

import jax
import jax.numpy as jnp
from jax.experimental import pallas as pl
from jax.experimental.pallas import tpu as pltpu

LOG_STD_MAX = 2.0
LOG_STD_MIN = -20.0
_HALF_LOG_2PI = 0.5 * math.log(2.0 * math.pi)


def _actor_kernel(max_action):
    """Kernel body with max_action baked in as a compile-time constant."""

    def kernel(x_ref, w1_ref, b1_ref, w2_ref, b2_ref,
               wmu_ref, bmu_ref, wls_ref, bls_ref, eps_ref,
               pi_ref, logpi_ref):
        x = x_ref[...]                                            # (TB, S)

        # fc1 + relu
        h1 = jnp.dot(x, w1_ref[...], preferred_element_type=jnp.float32) + b1_ref[...]
        h1 = jnp.maximum(h1, 0.0)

        # fc2 + relu
        h2 = jnp.dot(h1, w2_ref[...], preferred_element_type=jnp.float32) + b2_ref[...]
        h2 = jnp.maximum(h2, 0.0)

        # action heads, computed at their natural width A
        mu = jnp.dot(h2, wmu_ref[...], preferred_element_type=jnp.float32) + bmu_ref[...]
        ls = jnp.dot(h2, wls_ref[...], preferred_element_type=jnp.float32) + bls_ref[...]

        ls = jnp.tanh(ls)
        log_std = LOG_STD_MIN + 0.5 * (LOG_STD_MAX - LOG_STD_MIN) * (ls + 1.0)
        std = jnp.exp(log_std)

        # reparameterized sample
        eps = eps_ref[...]                                        # (TB, A)
        pre = mu + std * eps
        t = jnp.tanh(pre)

        # Normal(mu, std).log_prob(pre) = -0.5*eps^2 - log_std - 0.5*log(2*pi)
        log_prob = -0.5 * eps * eps - log_std - _HALF_LOG_2PI
        corrected = log_prob - jnp.log(1.0 - t * t + 1e-6)

        logpi_ref[...] = jnp.sum(corrected, axis=-1, keepdims=True)  # (TB, 1)
        pi_ref[...] = t * max_action                                  # (TB, A)

    return kernel


def _choose_tile_b(batch):
    """Batch tile: large to amortize per-step overhead, >=2 grid steps when big.

    Per-tile pipelined footprint (x + eps + pi + log_pi, f32, double-buffered)
    at tile_b=4096 is well under 2 MiB, so VMEM is never the constraint here.
    """
    if batch <= 512:
        return batch                      # one tile; tiny batches can't usefully split
    half = -(-batch // 2)                 # cdiv(batch, 2) -> keep >=2 steps (v7x megacore)
    half = -(-half // 8) * 8              # round up to a sublane multiple of 8
    return min(4096, half)


def actor_forward(x, params, eps, max_action, *, tile_b=None):
    """params: dict with w1,b1,w2,b2,wmu,bmu,wls,bls (W stored [in,out], b as [1,out])."""
    x = jnp.asarray(x, jnp.float32)
    eps = jnp.asarray(eps, jnp.float32)
    B, S = x.shape
    H = params["w1"].shape[1]
    A = params["wmu"].shape[1]

    if tile_b is None:
        tile_b = _choose_tile_b(B)
    grid = (pl.cdiv(B, tile_b),)

    batch_map = lambda i: (i, 0)      # tiles over batch
    resident_map = lambda i: (0, 0)   # weights stay resident in VMEM

    in_specs = [
        pl.BlockSpec((tile_b, S), batch_map),    # x
        pl.BlockSpec((S, H), resident_map),      # w1
        pl.BlockSpec((1, H), resident_map),      # b1
        pl.BlockSpec((H, H), resident_map),      # w2
        pl.BlockSpec((1, H), resident_map),      # b2
        pl.BlockSpec((H, A), resident_map),      # wmu
        pl.BlockSpec((1, A), resident_map),      # bmu
        pl.BlockSpec((H, A), resident_map),      # wls
        pl.BlockSpec((1, A), resident_map),      # bls
        pl.BlockSpec((tile_b, A), batch_map),    # eps (natural width, no padding)
    ]
    out_specs = [
        pl.BlockSpec((tile_b, A), batch_map),    # pi
        pl.BlockSpec((tile_b, 1), batch_map),    # log_pi
    ]
    out_shape = (
        jax.ShapeDtypeStruct((B, A), jnp.float32),
        jax.ShapeDtypeStruct((B, 1), jnp.float32),
    )

    flops = 2 * B * (S * H + H * H + 2 * H * A)
    transcendentals = 4 * B * A  # tanh(ls), exp(log_std), tanh(pre), log(1-t^2)
    bytes_accessed = 4 * (x.size + eps.size
                          + params["w1"].size + params["b1"].size
                          + params["w2"].size + params["b2"].size
                          + params["wmu"].size + params["bmu"].size
                          + params["wls"].size + params["bls"].size
                          + B * A + B)

    pi, log_pi = pl.pallas_call(
        _actor_kernel(float(max_action)),
        out_shape=out_shape,
        grid=grid,
        in_specs=in_specs,
        out_specs=out_specs,
        compiler_params=pltpu.CompilerParams(
            dimension_semantics=("parallel",),
            vmem_limit_bytes=32 * 1024 * 1024),
        cost_estimate=pl.CostEstimate(
            flops=int(flops),
            transcendentals=int(transcendentals),
            bytes_accessed=int(bytes_accessed)),
    )(
        x,
        params["w1"], params["b1"],
        params["w2"], params["b2"],
        params["wmu"], params["bmu"],
        params["wls"], params["bls"],
        eps,
    )

    return pi, log_pi[:, 0]           # PyTorch returns log_pi with shape [B]


def init_params(key, state_dim, action_dim, hidden_dim):
    """Deterministic PyTorch-style (Kaiming-uniform-ish) init, W stored [in,out]."""
    def linear(k, fan_in, fan_out):
        k_w, k_b = jax.random.split(k)
        bound = 1.0 / math.sqrt(fan_in)
        w = jax.random.uniform(k_w, (fan_in, fan_out), jnp.float32, -bound, bound)
        b = jax.random.uniform(k_b, (1, fan_out), jnp.float32, -bound, bound)
        return w, b

    k1, k2, k3, k4 = jax.random.split(key, 4)
    w1, b1 = linear(k1, state_dim, hidden_dim)
    w2, b2 = linear(k2, hidden_dim, hidden_dim)
    wmu, bmu = linear(k3, hidden_dim, action_dim)
    wls, bls = linear(k4, hidden_dim, action_dim)
    return dict(w1=w1, b1=b1, w2=w2, b2=b2, wmu=wmu, bmu=bmu, wls=wls, bls=bls)


def reference_forward(x, params, eps, max_action):
    """Pure-JAX reference matching the PyTorch module semantics."""
    h1 = jax.nn.relu(x @ params["w1"] + params["b1"])
    h2 = jax.nn.relu(h1 @ params["w2"] + params["b2"])
    mu = h2 @ params["wmu"] + params["bmu"]
    log_std = jnp.tanh(h2 @ params["wls"] + params["bls"])
    log_std = LOG_STD_MIN + 0.5 * (LOG_STD_MAX - LOG_STD_MIN) * (log_std + 1.0)
    std = jnp.exp(log_std)
    pre = mu + std * eps
    log_prob = -0.5 * eps * eps - log_std - 0.5 * math.log(2.0 * math.pi)
    t = jnp.tanh(pre)
    log_pi = jnp.sum(log_prob - jnp.log(1.0 - t * t + 1e-6), axis=-1)
    return t * max_action, log_pi


if __name__ == "__main__":
    # Small shapes implied by the module: state_dim=16, hidden_dim=32, action_dim=4
    state_dim, action_dim, hidden_dim = 16, 4, 32
    max_action = 1.0

    key = jax.random.PRNGKey(0)
    k_params, k_x, k_eps = jax.random.split(key, 3)
    params = init_params(k_params, state_dim, action_dim, hidden_dim)

    # --- small-batch run (single grid step) ---
    B = 2
    x = jax.random.normal(k_x, (B, state_dim), jnp.float32)
    eps = jax.random.normal(k_eps, (B, action_dim), jnp.float32)  # rsample noise

    pi, log_pi = actor_forward(x, params, eps, max_action)
    pi, log_pi = jax.block_until_ready((pi, log_pi))

    pi_ref, log_pi_ref = reference_forward(x, params, eps, max_action)
    assert pi.shape == (B, action_dim) and log_pi.shape == (B,)
    assert jnp.allclose(pi, pi_ref, atol=1e-5), "pi mismatch vs reference (B=2)"
    assert jnp.allclose(log_pi, log_pi_ref, atol=1e-4), "log_pi mismatch vs reference (B=2)"

    # --- multi-tile run (exercises the batch grid / resident-weight path) ---
    B2 = 2048
    k_x2, k_eps2 = jax.random.split(jax.random.PRNGKey(1))
    x2 = jax.random.normal(k_x2, (B2, state_dim), jnp.float32)
    eps2 = jax.random.normal(k_eps2, (B2, action_dim), jnp.float32)

    pi2, log_pi2 = actor_forward(x2, params, eps2, max_action)
    pi2, log_pi2 = jax.block_until_ready((pi2, log_pi2))
    pi2_ref, log_pi2_ref = reference_forward(x2, params, eps2, max_action)
    assert jnp.allclose(pi2, pi2_ref, atol=1e-5), "pi mismatch vs reference (B=2048)"
    assert jnp.allclose(log_pi2, log_pi2_ref, atol=1e-4), "log_pi mismatch vs reference (B=2048)"

    print("KERNEL_OK")
</pallas_src>

<mosaic_0001>
module attributes {stable_mosaic.version = 11 : i64} {
  func.func @kernel(%arg0: i32, %arg1: memref<2x16xf32, #tpu.memory_space<vmem>>, %arg2: memref<16x32xf32, #tpu.memory_space<vmem>>, %arg3: memref<1x32xf32, #tpu.memory_space<vmem>>, %arg4: memref<32x32xf32, #tpu.memory_space<vmem>>, %arg5: memref<1x32xf32, #tpu.memory_space<vmem>>, %arg6: memref<32x4xf32, #tpu.memory_space<vmem>>, %arg7: memref<1x4xf32, #tpu.memory_space<vmem>>, %arg8: memref<32x4xf32, #tpu.memory_space<vmem>>, %arg9: memref<1x4xf32, #tpu.memory_space<vmem>>, %arg10: memref<2x4xf32, #tpu.memory_space<vmem>>, %arg11: memref<2x4xf32, #tpu.memory_space<vmem>>, %arg12: memref<2x1xf32, #tpu.memory_space<vmem>>) attributes {dimension_semantics = [#tpu.dimension_semantics<parallel>], iteration_bounds = array<i64: 1>, scalar_prefetch = 0 : i64, scratch_operands = 0 : i64, tpu.core_type = #tpu.core_type<tc>, window_params = [{transform_indices = @transform_0, window_bounds = array<i64: 2, 16>}, {pipeline_mode = #tpu.pipeline_mode<synchronous>, transform_indices = @transform_1, window_bounds = array<i64: 16, 32>}, {pipeline_mode = #tpu.pipeline_mode<synchronous>, transform_indices = @transform_2, window_bounds = array<i64: 1, 32>}, {pipeline_mode = #tpu.pipeline_mode<synchronous>, transform_indices = @transform_3, window_bounds = array<i64: 32, 32>}, {pipeline_mode = #tpu.pipeline_mode<synchronous>, transform_indices = @transform_4, window_bounds = array<i64: 1, 32>}, {pipeline_mode = #tpu.pipeline_mode<synchronous>, transform_indices = @transform_5, window_bounds = array<i64: 32, 4>}, {pipeline_mode = #tpu.pipeline_mode<synchronous>, transform_indices = @transform_6, window_bounds = array<i64: 1, 4>}, {pipeline_mode = #tpu.pipeline_mode<synchronous>, transform_indices = @transform_7, window_bounds = array<i64: 32, 4>}, {pipeline_mode = #tpu.pipeline_mode<synchronous>, transform_indices = @transform_8, window_bounds = array<i64: 1, 4>}, {transform_indices = @transform_9, window_bounds = array<i64: 2, 4>}, {transform_indices = @transform_10, window_bounds = array<i64: 2, 4>}, {transform_indices = @transform_11, window_bounds = array<i64: 2, 1>}]} {
    %c0 = arith.constant 0 : index
    %c0_0 = arith.constant 0 : index
    %0 = vector.load %arg1[%c0, %c0_0] : memref<2x16xf32, #tpu.memory_space<vmem>>, vector<2x16xf32>
    %c0_1 = arith.constant 0 : index
    %c0_2 = arith.constant 0 : index
    %1 = vector.load %arg2[%c0_1, %c0_2] : memref<16x32xf32, #tpu.memory_space<vmem>>, vector<16x32xf32>
    %cst = arith.constant dense<0.000000e+00> : vector<2x32xf32>
    %2 = tpu.matmul %0, %1, %cst {dimension_numbers = #tpu.dot_dimension_numbers<[1], [0], [0], [1], [0, 0, 1, 1], [], []>} : vector<2x16xf32>, vector<16x32xf32>, vector<2x32xf32> -> vector<2x32xf32>
    %c0_3 = arith.constant 0 : index
    %c0_4 = arith.constant 0 : index
    %3 = vector.load %arg3[%c0_3, %c0_4] : memref<1x32xf32, #tpu.memory_space<vmem>>, vector<1x32xf32>
    %4 = vector.broadcast %3 : vector<1x32xf32> to vector<2x32xf32>
    %5 = arith.addf %2, %4 : vector<2x32xf32>
    %cst_5 = arith.constant 0.000000e+00 : f32
    %6 = vector.broadcast %cst_5 : f32 to vector<2x32xf32>
    %7 = arith.maximumf %5, %6 : vector<2x32xf32>
    %c0_6 = arith.constant 0 : index
    %c0_7 = arith.constant 0 : index
    %8 = vector.load %arg4[%c0_6, %c0_7] : memref<32x32xf32, #tpu.memory_space<vmem>>, vector<32x32xf32>
    %cst_8 = arith.constant dense<0.000000e+00> : vector<2x32xf32>
    %9 = tpu.matmul %7, %8, %cst_8 {dimension_numbers = #tpu.dot_dimension_numbers<[1], [0], [0], [1], [0, 0, 1, 1], [], []>} : vector<2x32xf32>, vector<32x32xf32>, vector<2x32xf32> -> vector<2x32xf32>
    %c0_9 = arith.constant 0 : index
    %c0_10 = arith.constant 0 : index
    %10 = vector.load %arg5[%c0_9, %c0_10] : memref<1x32xf32, #tpu.memory_space<vmem>>, vector<1x32xf32>
    %11 = vector.broadcast %10 : vector<1x32xf32> to vector<2x32xf32>
    %12 = arith.addf %9, %11 : vector<2x32xf32>
    %cst_11 = arith.constant 0.000000e+00 : f32
    %13 = vector.broadcast %cst_11 : f32 to vector<2x32xf32>
    %14 = arith.maximumf %12, %13 : vector<2x32xf32>
    %c0_12 = arith.constant 0 : index
    %c0_13 = arith.constant 0 : index
    %15 = vector.load %arg6[%c0_12, %c0_13] : memref<32x4xf32, #tpu.memory_space<vmem>>, vector<32x4xf32>
    %cst_14 = arith.constant dense<0.000000e+00> : vector<2x4xf32>
    %16 = tpu.matmul %14, %15, %cst_14 {dimension_numbers = #tpu.dot_dimension_numbers<[1], [0], [0], [1], [0, 0, 1, 1], [], []>} : vector<2x32xf32>, vector<32x4xf32>, vector<2x4xf32> -> vector<2x4xf32>
    %c0_15 = arith.constant 0 : index
    %c0_16 = arith.constant 0 : index
    %17 = vector.load %arg7[%c0_15, %c0_16] : memref<1x4xf32, #tpu.memory_space<vmem>>, vector<1x4xf32>
    %18 = vector.broadcast %17 : vector<1x4xf32> to vector<2x4xf32>
    %19 = arith.addf %16, %18 : vector<2x4xf32>
    %c0_17 = arith.constant 0 : index
    %c0_18 = arith.constant 0 : index
    %20 = vector.load %arg8[%c0_17, %c0_18] : memref<32x4xf32, #tpu.memory_space<vmem>>, vector<32x4xf32>
    %cst_19 = arith.constant dense<0.000000e+00> : vector<2x4xf32>
    %21 = tpu.matmul %14, %20, %cst_19 {dimension_numbers = #tpu.dot_dimension_numbers<[1], [0], [0], [1], [0, 0, 1, 1], [], []>} : vector<2x32xf32>, vector<32x4xf32>, vector<2x4xf32> -> vector<2x4xf32>
    %c0_20 = arith.constant 0 : index
    %c0_21 = arith.constant 0 : index
    %22 = vector.load %arg9[%c0_20, %c0_21] : memref<1x4xf32, #tpu.memory_space<vmem>>, vector<1x4xf32>
    %23 = vector.broadcast %22 : vector<1x4xf32> to vector<2x4xf32>
    %24 = arith.addf %21, %23 : vector<2x4xf32>
    %25 = math.tanh %24 : vector<2x4xf32>
    %cst_22 = arith.constant 1.000000e+00 : f32
    %26 = vector.broadcast %cst_22 : f32 to vector<2x4xf32>
    %27 = arith.addf %25, %26 : vector<2x4xf32>
    %cst_23 = arith.constant 1.100000e+01 : f32
    %28 = vector.broadcast %cst_23 : f32 to vector<2x4xf32>
    %29 = arith.mulf %28, %27 : vector<2x4xf32>
    %cst_24 = arith.constant -2.000000e+01 : f32
    %30 = vector.broadcast %cst_24 : f32 to vector<2x4xf32>
    %31 = arith.addf %30, %29 : vector<2x4xf32>
    %32 = math.exp %31 : vector<2x4xf32>
    %c0_25 = arith.constant 0 : index
    %c0_26 = arith.constant 0 : index
    %33 = vector.load %arg10[%c0_25, %c0_26] : memref<2x4xf32, #tpu.memory_space<vmem>>, vector<2x4xf32>
    %34 = arith.mulf %32, %33 : vector<2x4xf32>
    %35 = arith.addf %19, %34 : vector<2x4xf32>
    %36 = math.tanh %35 : vector<2x4xf32>
    %cst_27 = arith.constant -5.000000e-01 : f32
    %37 = vector.broadcast %cst_27 : f32 to vector<2x4xf32>
    %38 = arith.mulf %37, %33 : vector<2x4xf32>
    %39 = arith.mulf %38, %33 : vector<2x4xf32>
    %40 = arith.subf %39, %31 : vector<2x4xf32>
    %cst_28 = arith.constant 0.918938517 : f32
    %41 = vector.broadcast %cst_28 : f32 to vector<2x4xf32>
    %42 = arith.subf %40, %41 : vector<2x4xf32>
    %43 = arith.mulf %36, %36 : vector<2x4xf32>
    %cst_29 = arith.constant 1.000000e+00 : f32
    %44 = vector.broadcast %cst_29 : f32 to vector<2x4xf32>
    %45 = arith.subf %44, %43 : vector<2x4xf32>
    %cst_30 = arith.constant 9.99999997E-7 : f32
    %46 = vector.broadcast %cst_30 : f32 to vector<2x4xf32>
    %47 = arith.addf %45, %46 : vector<2x4xf32>
    %48 = math.log %47 : vector<2x4xf32>
    %49 = arith.subf %42, %48 : vector<2x4xf32>
    %cst_31 = arith.constant dense<0.000000e+00> : vector<2xf32>
    %50 = vector.multi_reduction <add>, %49, %cst_31 [1] : vector<2x4xf32> to vector<2xf32>
    %51 = vector.shape_cast %50 : vector<2xf32> to vector<2x1xf32>
    %c0_32 = arith.constant 0 : index
    %c0_33 = arith.constant 0 : index
    %52 = vector.load %arg12[%c0_32, %c0_33] : memref<2x1xf32, #tpu.memory_space<vmem>>, vector<2x1xf32>
    tpu.vector_store %arg12[%c0_32, %c0_33], %51 {strides = array<i32>} : memref<2x1xf32, #tpu.memory_space<vmem>>, vector<2x1xf32>,
    %cst_34 = arith.constant 1.000000e+00 : f32
    %53 = vector.broadcast %cst_34 : f32 to vector<2x4xf32>
    %54 = arith.mulf %36, %53 : vector<2x4xf32>
    %c0_35 = arith.constant 0 : index
    %c0_36 = arith.constant 0 : index
    %55 = vector.load %arg11[%c0_35, %c0_36] : memref<2x4xf32, #tpu.memory_space<vmem>>, vector<2x4xf32>
    tpu.vector_store %arg11[%c0_35, %c0_36], %54 {strides = array<i32>} : memref<2x4xf32, #tpu.memory_space<vmem>>, vector<2x4xf32>,
    return
  }
  func.func @transform_0(%arg0: i32) -> (i32, i32) {
    %c0_i32 = arith.constant 0 : i32
    %c0_i32_0 = arith.constant 0 : i32
    return %arg0, %c0_i32 : i32, i32
  }
  func.func @transform_1(%arg0: i32) -> (i32, i32) {
    %c0_i32 = arith.constant 0 : i32
    %c0_i32_0 = arith.constant 0 : i32
    %c0_i32_1 = arith.constant 0 : i32
    return %c0_i32, %c0_i32_0 : i32, i32
  }
  func.func @transform_2(%arg0: i32) -> (i32, i32) {
    %c0_i32 = arith.constant 0 : i32
    %c0_i32_0 = arith.constant 0 : i32
    %c0_i32_1 = arith.constant 0 : i32
    return %c0_i32, %c0_i32_0 : i32, i32
  }
  func.func @transform_3(%arg0: i32) -> (i32, i32) {
    %c0_i32 = arith.constant 0 : i32
    %c0_i32_0 = arith.constant 0 : i32
    %c0_i32_1 = arith.constant 0 : i32
    return %c0_i32, %c0_i32_0 : i32, i32
  }
  func.func @transform_4(%arg0: i32) -> (i32, i32) {
    %c0_i32 = arith.constant 0 : i32
    %c0_i32_0 = arith.constant 0 : i32
    %c0_i32_1 = arith.constant 0 : i32
    return %c0_i32, %c0_i32_0 : i32, i32
  }
  func.func @transform_5(%arg0: i32) -> (i32, i32) {
    %c0_i32 = arith.constant 0 : i32
    %c0_i32_0 = arith.constant 0 : i32
    %c0_i32_1 = arith.constant 0 : i32
    return %c0_i32, %c0_i32_0 : i32, i32
  }
  func.func @transform_6(%arg0: i32) -> (i32, i32) {
    %c0_i32 = arith.constant 0 : i32
    %c0_i32_0 = arith.constant 0 : i32
    %c0_i32_1 = arith.constant 0 : i32
    return %c0_i32, %c0_i32_0 : i32, i32
  }
  func.func @transform_7(%arg0: i32) -> (i32, i32) {
    %c0_i32 = arith.constant 0 : i32
    %c0_i32_0 = arith.constant 0 : i32
    %c0_i32_1 = arith.constant 0 : i32
    return %c0_i32, %c0_i32_0 : i32, i32
  }
  func.func @transform_8(%arg0: i32) -> (i32, i32) {
    %c0_i32 = arith.constant 0 : i32
    %c0_i32_0 = arith.constant 0 : i32
    %c0_i32_1 = arith.constant 0 : i32
    return %c0_i32, %c0_i32_0 : i32, i32
  }
  func.func @transform_9(%arg0: i32) -> (i32, i32) {
    %c0_i32 = arith.constant 0 : i32
    %c0_i32_0 = arith.constant 0 : i32
    return %arg0, %c0_i32 : i32, i32
  }
  func.func @transform_10(%arg0: i32) -> (i32, i32) {
    %c0_i32 = arith.constant 0 : i32
    %c0_i32_0 = arith.constant 0 : i32
    return %arg0, %c0_i32 : i32, i32
  }
  func.func @transform_11(%arg0: i32) -> (i32, i32) {
    %c0_i32 = arith.constant 0 : i32
    %c0_i32_0 = arith.constant 0 : i32
    return %arg0, %c0_i32 : i32, i32
  }
}

</mosaic_0001>

<bundles_post_ra>
// kernel: tpu_custom_call.1
= control target key start
LH: loop header
LB: loop body
LE: loop exit
PB: predicated region body
PF: predicated region fallthrough
CT: control target
= control target key end

     0   :  { %v543_v2 = vmov 0.0|0.0   ;;  %vm544_vm0 = vmmov 0   ;;  %v545_v4 = vmov 0.0   ;;  %s689_s0 = inlined_call_operand.vmem [shape: f32[2,16], index: 0, kind: input, shape index: {}]   ;;  %s690_s1 = inlined_call_operand.vmem [shape: f32[16,32], index: 1, kind: input, shape index: {}]   ;;  %s691_s2 = inlined_call_operand.vmem [shape: f32[1,32], index: 2, kind: input, shape index: {}]   ;;  %s692_s3 = inlined_call_operand.vmem [shape: f32[32,32], index: 3, kind: input, shape index: {}]   ;;  %s693_s4 = inlined_call_operand.vmem [shape: f32[1,32], index: 4, kind: input, shape index: {}]   ;;  %s694_s5 = inlined_call_operand.vmem [shape: f32[32,4], index: 5, kind: input, shape index: {}]   ;;  %s695_s6 = inlined_call_operand.vmem [shape: f32[1,4], index: 6, kind: input, shape index: {}]   ;;  %s696_s7 = inlined_call_operand.vmem [shape: f32[32,4], index: 7, kind: input, shape index: {}]   ;;  %s697_s8 = inlined_call_operand.vmem [shape: f32[1,4], index: 8, kind: input, shape index: {}]   ;;  %s698_s9 = inlined_call_operand.vmem [shape: f32[2,4], index: 9, kind: input, shape index: {}]   ;;  %s699_s10 = inlined_call_operand.hbm [shape: f32[2,4], index: 10, kind: output, shape index: {0}]   ;;  %s700_s11 = inlined_call_operand.vmem [shape: f32[2,1], index: 11, kind: output, shape index: {1}]  }
   0x1   :  { %v39_v0 = vld [vmem:[%s690_s1] sm:$0xff]  ;;  %v40_v1 = vld [vmem:[%s690_s1 + $0x8] sm:$0xff]  ;;  %486 = vmatprep.subr.bf16.mxu0 %v543_v2  ;;  %450 = vmatprep.mubr.msk.f32.mxu0 %vm544_vm0, %v545_v4 }
   0x2   :  { %v487_v3 = vpack.c.bf16 %v40_v1, %v39_v0  ;;  %v123_v5 = vld [vmem:[%s692_s3] sm:$0xff]  ;;  %v124_v6 = vld [vmem:[%s692_s3 + $0x8] sm:$0xff]  ;;  %489 = vmatprep.subr.bf16.mxu1 %v543_v2  ;;  %461 = vmatprep.mubr.msk.f32.mxu1 %vm544_vm0, %v545_v4 }
   0x3   :  { %v490_v7 = vpack.c.bf16 %v124_v6, %v123_v5 }
   0x4   :  { %17 = vsyncpa [#allocation3], 0  ;;  %488 = vmatpush3.bf16.msra.mxu0 %v487_v3  ;;  %v38_v8 = vld [vmem:[%s689_s0] sm:$0x3]  ;;  %vm48_vm1 = vcmask 130048   ;;  %v125_v9 = vld [vmem:[%s692_s3 + $0x10] sm:$0xff] }
   0x5   :  { %491 = vmatpush3.bf16.msra.mxu1 %v490_v7  ;;  %495 = vmatprep.subr.bf16.mxu0 %v543_v2  ;;  %v126_v10 = vld [vmem:[%s692_s3 + $0x18] sm:$0xff]  ;;  %v209_v12 = vld [vmem:[%s694_s5] sm:$0xff]  ;;  %v210_v13 = vld [vmem:[%s694_s5 + $0x8] sm:$0xff]  ;;  %vm134_vm2 = vcmask 261120   ;;  %vm394_vm3 = vcmask 25600  }
   0x6   :  { %492 = vmatprep.subr.bf16.mxu1 %v543_v2  ;;  %v493_v11 = vpack.c.bf16 %v126_v10, %v125_v9  ;;  %v496_v14 = vpack.c.bf16 %v210_v13, %v209_v12  ;;  %v419_v15 = vld [vmem:[%s691_s2] ss:$0 sm:$0xff]  ;;  %v294_v17 = vld [vmem:[%s696_s7 + $0x8] sm:$0xff]  ;;  %v211_v23 = vld [vmem:[%s694_s5 + $0x10] sm:$0xff] }
   0x7   :  { %451 = vmatmul.mubr.msk.f32.vlgmr.msra.gmra.mrb[0].mxu0 %vm48_vm1, %v38_v8  ;;  %v293_v16 = vld [vmem:[%s696_s7] sm:$0xff]  ;;  %v212_v24 = vld [vmem:[%s694_s5 + $0x18] sm:$0xff]  ;;  %v295_v25 = vld [vmem:[%s696_s7 + $0x10] sm:$0xff] }
   0x8   :  { %472 = vmatprep.mubr.msk.f32.mxu0 %vm544_vm0, %v545_v4  ;;  %497 = vmatpush3.bf16.msra.mxu0 %v496_v14  ;;  %v502_v21 = vpack.c.bf16 %v294_v17, %v293_v16  ;;  %v499_v26 = vpack.c.bf16 %v212_v24, %v211_v23  ;;  %v296_v27 = vld [vmem:[%s696_s7 + $0x18] sm:$0xff]  ;;  %v421_v29 = vld [vmem:[%s693_s4] ss:$0 sm:$0xff] }
   0x9   :  { %494 = vmatpush3.bf16.msra.mxu1 %v493_v11  ;;  %498 = vmatprep.subr.bf16.mxu0 %v543_v2  ;;  %v505_v28 = vpack.c.bf16 %v296_v27, %v295_v25  ;;  %v425_v34 = vld [vmem:[%s697_s8] ss:$0 sm:$0xff] }
   0xa   :  { %501 = vmatprep.subr.bf16.mxu1 %v543_v2  ;;  %v423_v45 = vld [vmem:[%s695_s6] ss:$0 sm:$0xff]  ;;  %s546_s6 = smov [#allocation2]  }
   0xb   :  { %v380_v47 = vld [vmem:[%s698_s9] sm:$0x3]  ;;  %s407_s8 = sshll.u32 %s546_s6, 4  ;;  %s408_s8 = int_to_ptr.vmem [resolvable:$true] %s407_s8 }
   0xc   :  { %500 = vmatpush3.bf16.msra.mxu0 %v499_v26  ;;  %v384_v55 = vmul.f32 -0.5, %v380_v47  ;;  %s519_s9 = scalar_lea.vmem %s408_s8, 32  ;;  %p524_p1 = scmp.lt.s32.totalorder %s408_s8, %s408_s8 }
   0xd   :  { %p520_p0 = scmp.ne.s32.totalorder %s408_s8, %s519_s9  ;;  %p525_p2 = scmp.lt.s32.totalorder %s519_s9, %s519_s9 }
   0xe   :  { %v385_v56 = vmul.f32 %v384_v55, %v380_v47 }
   0xf   :  { %p526_p3 = por %p525_p2, %p524_p1 }
  0x11   :  { %p527_p4 = pnand %p526_p3, %p520_p0 }
  0xda   :  { %v118_v18 = vpop.f32.mrb[0].mxu0 }
  0xdb   :  { %v119_v19 = vadd.f32 %v419_v15, %v118_v18  ;;  %v452_v20 = vpop.f32.mrb[1].mxu0 }
  0xdd   :  { %v122_v22 = vmax.f32 %v119_v19, 0.0 }
  0xdf   :  { %462 = vmatmul.mubr.msk.f32.vlgmr.msra.gmra.mrb[0].mxu1 %vm134_vm2, %v122_v22 }
  0xe0   :  { %503 = vmatpush3.bf16.msra.mxu1 %v502_v21  ;;  %483 = vmatprep.mubr.msk.f32.mxu1 %vm544_vm0, %v545_v4 }
  0xe1   :  { %504 = vmatprep.subr.bf16.mxu1 %v543_v2 }
  0xe4   :  { %506 = vmatpush3.bf16.msra.mxu1 %v505_v28 }
 0x1b2   :  { %v204_v30 = vpop.f32.mrb[0].mxu1 }
 0x1b3   :  { %v205_v31 = vadd.f32 %v421_v29, %v204_v30  ;;  %v463_v32 = vpop.f32.mrb[1].mxu1 }
 0x1b5   :  { %v208_v33 = vmax.f32 %v205_v31, 0.0 }
 0x1b7   :  { %473 = vmatmul.mubr.msk.f32.vlgmr.msra.gmra.mrb[2].mxu0 %vm134_vm2, %v208_v33  ;;  %484 = vmatmul.mubr.msk.f32.vlgmr.msra.gmra.mrb[2].mxu1 %vm134_vm2, %v208_v33 }
 0x28a   :  { %v289_v35 = vpop.f32.mrb[2].mxu0  ;;  %v370_v36 = vpop.f32.mrb[2].mxu1 }
 0x28b   :  { %v371_v37 = vadd.f32 %v425_v34, %v370_v36  ;;  %v474_v38 = vpop.f32.mrb[3].mxu0  ;;  %v485_v39 = vpop.f32.mrb[3].mxu1  ;;  %v290_v48 = vadd.f32 %v423_v45, %v289_v35 }
 0x28d   :  { %511 = vtanh.f32 %v371_v37 }
 0x297   :  { %v512_v40 = vpop.eup %511 }
 0x298   :  { %v375_v41 = vadd.f32 1.0, %v512_v40 }
 0x29a   :  { %v376_v42 = vmul.f32 11.0, %v375_v41 }
 0x29c   :  { %v377_v43 = vadd.f32 -20.0, %v376_v42 }
 0x29e   :  { %v378_v44 = vmul.f32 1.442695, %v377_v43  ;;  %v386_v57 = vsub.f32 %v385_v56, %v377_v43 }
 0x2a0   :  { %513 = vpow2.f32 %v378_v44  ;;  %v427_v59 = vadd.f32 -0.9189385, %v386_v57 }
 0x2aa   :  { %v514_v46 = vpop.eup %513 }
 0x2ab   :  { %v381_v49 = vmul.f32 %v514_v46, %v380_v47 }
 0x2ad   :  { %v382_v50 = vadd.f32 %v381_v49, %v290_v48 }
 0x2af   :  { %515 = vtanh.f32 %v382_v50 }
 0x2b9   :  { %v516_v51 = vpop.eup %515 }
 0x2ba   :  { %v388_v52 = vmul.f32 %v516_v51, %v516_v51  ;;  %400 = vst.msk [vmem:[#allocation2] sm:$0x3] %vm394_vm3, %v516_v51 }
 0x2bc   :  { %v389_v53 = vsub.f32 1.0, %v388_v52 }
 0x2be   :  { %v390_v54 = vadd.f32 1e-06, %v389_v53 }
 0x2c0   :  { %517 = vlog2.f32 %v390_v54 }
 0x2ca   :  { %v518_v58 = vpop.eup %517 }
 0x2cb   :  { %v392_v60 = vmul.f32 0.6931472, %v518_v58 }
 0x2cd   :  { %v393_v61 = vsub.f32 %v427_v59, %v392_v60 }
 0x2cf   :  { %v395_v62 = vsel %vm394_vm3, %v393_v61, 0.0 }
 0x2d0   :  { %396 = vadd.xlane.f32.xlu0 %v395_v62 }
 0x2d1   :  { %530 = shalt.err (!%p527_p4)
}
 0x2d2   :  { %s531_s12 = scalar_lea.hbm %s699_s10, 32 }
 0x2d3   :  { %p532_p5 = scmp.ne.s32.totalorder %s699_s10, %s531_s12  ;;  %p535_p6 = scmp.lt.u32.totalorder %s531_s12, %s699_s10 }
 0x2d5   :  { %p537_p7 = pnand %p535_p6, %p532_p5 }
 0x2d7   :  { %540 = shalt.err (!%p537_p7)
}
 0x2d8   :  { %410 = dma.vmem_to_hbm [thread:$0]  %s408_s8, 32, %s699_s10, [#allocation3]   ;;  %vm398_vm4 = vcmask 1024  }
 0x35d   :  { %v397_v63 = vpop.xlane.xlu0 %396 }
 0x35e   :  { %399 = vst.msk [vmem:[%s700_s11] sm:$0x3] %vm398_vm4, %v397_v63 }
 0x35f   :  { %541 = dma.done.wait [#allocation3], 32  }
 0x360   :  { %542 = vsyncadd [#allocation3], 4294967264 }
 0x361   :  { %418 = vsyncpa [#allocation3], 1 }

</bundles_post_ra>
